<compile_context>
chip_gen: v6e
topology: v6e:2x2x1
jax: 0.10.0
libtpu: 0.0.40
codegen_flags: <defaults>
</compile_context>

<pallas_src>
import functools

import jax
import jax.numpy as jnp
from jax.experimental import pallas as pl
from jax.experimental.pallas import tpu as pltpu


def _round_up(a, m):
    return ((a + m - 1) // m) * m


def _vmem_cap_bytes():
    """Generation-aware VMEM ceiling (v7x: 64 MiB/TC, v5e/v6e: 128 MiB)."""
    try:
        cap = int(pltpu.get_tpu_info().vmem_capacity_bytes)
    except Exception:  # conservative fallback: assume the smallest (v7x)
        cap = 64 << 20
    return cap * 3 // 4


# ---------------------------------------------------------------------------
# Kernel: one RGCNConv layer (basis decomposition + mean scatter + root/bias)
# ---------------------------------------------------------------------------
def _rgcn_layer_kernel(first_ref, ntiles_ref,                  # scalar prefetch (SMEM)
                       dst_ref, xj_ref, coeff_ref, w_ref,      # streamed inputs
                       x_ref, root_ref, bias_ref,              # per-block / constants
                       out_ref,                                # resident accumulator
                       *, num_bases, d_out, t_n, t_e, apply_relu):
    i = pl.program_id(0)      # node block            (parallel)
    k = pl.program_id(1)      # edge-tile step inside this block's range (arbitrary)

    @pl.when(k == 0)
    def _init():
        out_ref[...] = jnp.zeros_like(out_ref)

    @pl.when(k < ntiles_ref[i])          # skip steps past this block's edge range
    def _accumulate():
        # one stacked MXU matmul: y[:, b*D:(b+1)*D] == x_j @ basis[b]
        y = jnp.dot(xj_ref[...], w_ref[...], preferred_element_type=jnp.float32)
        # per-edge basis combination; edge_norm and 1/deg are pre-folded into coeff
        coeff = coeff_ref[...]                                   # (t_e, B)
        msgs = coeff[:, 0:1] * y[:, 0:d_out]
        for b in range(1, num_bases):
            msgs = msgs + coeff[:, b:b + 1] * y[:, b * d_out:(b + 1) * d_out]
        # in-kernel one-hot over THIS node block only (built from int32 dst ids,
        # never touches HBM); the MXU performs the segment scatter-add.
        rows = jax.lax.broadcasted_iota(jnp.int32, (t_n, t_e), 0) + i * t_n
        onehot = (rows == dst_ref[...]).astype(jnp.float32)      # (t_n, t_e)
        out_ref[...] += jnp.dot(onehot, msgs, preferred_element_type=jnp.float32)

    @pl.when(k == pl.num_programs(1) - 1)
    def _finalize():
        res = out_ref[...] + jnp.dot(x_ref[...], root_ref[...],
                                     preferred_element_type=jnp.float32)
        res = res + bias_ref[...]
        if apply_relu:
            res = jnp.maximum(res, 0.0)
        out_ref[...] = res.astype(out_ref.dtype)


# data-dependent index maps (scalar-prefetch refs are trailing positional args)
def _edge_block(i, k, first_ref, ntiles_ref):
    # clamp to the block's own tile range; once saturated the block index stays
    # constant, so the pipeline skips the redundant DMA for skipped steps.
    return first_ref[i] + jnp.minimum(k, jnp.maximum(ntiles_ref[i] - 1, 0))


def _xj_map(i, k, first_ref, ntiles_ref):
    return (_edge_block(i, k, first_ref, ntiles_ref), 0)


def _dst_map(i, k, first_ref, ntiles_ref):
    return (0, _edge_block(i, k, first_ref, ntiles_ref))


# ---------------------------------------------------------------------------
# Wrapper for one RGCNConv layer
# ---------------------------------------------------------------------------
def rgcn_conv(x, edge_index, edge_type, edge_norm, att, basis, root, bias, *,
              apply_relu, edge_tile=2048, node_tile=256):
    x = x.astype(jnp.float32)
    n_nodes, d_in = x.shape
    num_bases, _, d_out = basis.shape
    n_edges = edge_index.shape[1]
    src = edge_index[0].astype(jnp.int32)
    dst = edge_index[1].astype(jnp.int32)        # PyG flow: source -> target

    # ---- XLA glue: data-dependent gathers / sort / norm folding -------------
    order = jnp.argsort(dst)                     # sort edges by destination
    src_s, dst_s, type_s = src[order], dst[order], edge_type[order]

    deg = jnp.zeros((n_nodes,), jnp.float32).at[dst].add(1.0)
    deg = jnp.maximum(deg, 1.0)
    scale = 1.0 / deg[dst_s]                     # 'mean' aggregation
    if edge_norm is not None:
        scale = scale * edge_norm.astype(jnp.float32)[order]

    xj = jnp.take(x, src_s, axis=0)                                    # (E, D_in)
    coeff = jnp.take(att.astype(jnp.float32), type_s, axis=0) * scale[:, None]

    # stacked basis weights: column block b of w_stacked == basis[b]
    w_stacked = jnp.transpose(basis.astype(jnp.float32), (1, 0, 2)).reshape(
        d_in, num_bases * d_out)

    # ---- tiling --------------------------------------------------------------
    t_e = min(edge_tile, _round_up(max(n_edges, 1), 128))
    e_pad = _round_up(max(n_edges, 1), t_e)
    t_n = min(node_tile, _round_up(n_nodes, 8))
    while t_n > 8 and _round_up(n_nodes, t_n) // t_n < 2:   # keep >=2 node blocks
        t_n = _round_up(t_n // 2, 8)                        # (megacore / v7x 2 TCs)
    n_pad = _round_up(n_nodes, t_n)
    nb, kb = n_pad // t_n, e_pad // t_e

    # per-node-block edge-tile ranges for scalar prefetch: node block i streams
    # only edge tiles [first_tile[i], first_tile[i] + ntiles[i]) of the sorted list.
    starts = jnp.arange(nb, dtype=jnp.int32) * t_n
    lo = jnp.searchsorted(dst_s, starts, side='left')
    hi = jnp.searchsorted(dst_s, starts + t_n, side='left')
    empty = hi <= lo
    first_tile = jnp.where(empty, 0, lo // t_e).astype(jnp.int32)
    last_tile = jnp.where(empty, 0, jnp.maximum(hi - 1, 0) // t_e).astype(jnp.int32)
    ntiles = jnp.where(empty, 0, last_tile - first_tile + 1).astype(jnp.int32)

    # ---- pad to tile multiples (padding edges: dst == n_pad never matches a
    #      node row of any block; coeff == 0 as extra safety) -----------------
    pad_e = e_pad - n_edges
    xj = jnp.pad(xj, ((0, pad_e), (0, 0)))
    coeff = jnp.pad(coeff, ((0, pad_e), (0, 0)))
    dst_row = jnp.pad(dst_s, (0, pad_e), constant_values=n_pad).reshape(1, e_pad)
    x_pad = jnp.pad(x, ((0, n_pad - n_nodes), (0, 0)))
    root = root.astype(jnp.float32)
    bias2 = bias.reshape(1, d_out).astype(jnp.float32)

    kernel = functools.partial(_rgcn_layer_kernel, num_bases=num_bases,
                               d_out=d_out, t_n=t_n, t_e=t_e,
                               apply_relu=apply_relu)

    # ---- VMEM budget: double-buffered streamed tiles + resident operands ----
    lane = lambda c: _round_up(c, 128)
    vmem_bytes = 4 * (
        2 * (t_e * lane(d_in) + t_e * lane(num_bases) + 8 * t_e)       # xj, coeff, dst
        + 2 * (t_n * lane(d_in) + t_n * lane(d_out))                   # x tile, out acc
        + _round_up(d_in, 8) * (lane(num_bases * d_out) + lane(d_out)) # W, root
        + 8 * lane(d_out))                                             # bias
    vmem_limit = int(min(max(2 * vmem_bytes, 4 << 20), _vmem_cap_bytes()))

    cost = pl.CostEstimate(
        flops=int(2 * e_pad * d_in * num_bases * d_out     # stacked basis matmul
                  + 2 * e_pad * t_n * d_out                # one-hot scatter matmul
                  + 2 * n_pad * d_in * d_out),             # root matmul
        transcendentals=0,
        bytes_accessed=int(4 * (e_pad * (d_in + num_bases + 1)
                                + n_pad * (d_in + d_out)
                                + d_in * (num_bases * d_out + d_out) + d_out)))

    out = pl.pallas_call(
        kernel,
        out_shape=jax.ShapeDtypeStruct((n_pad, d_out), jnp.float32),
        grid_spec=pltpu.PrefetchScalarGridSpec(
            num_scalar_prefetch=2,
            grid=(nb, kb),
            in_specs=[
                pl.BlockSpec((1, t_e), _dst_map),                               # dst ids
                pl.BlockSpec((t_e, d_in), _xj_map),                             # x_j
                pl.BlockSpec((t_e, num_bases), _xj_map),                        # coeff
                pl.BlockSpec((d_in, num_bases * d_out), lambda i, k, f, n: (0, 0)),
                pl.BlockSpec((t_n, d_in), lambda i, k, f, n: (i, 0)),           # x (root)
                pl.BlockSpec((d_in, d_out), lambda i, k, f, n: (0, 0)),         # root
                pl.BlockSpec((1, d_out), lambda i, k, f, n: (0, 0)),            # bias
            ],
            out_specs=pl.BlockSpec((t_n, d_out), lambda i, k, f, n: (i, 0)),
        ),
        compiler_params=pltpu.CompilerParams(
            dimension_semantics=("parallel", "arbitrary"),
            vmem_limit_bytes=vmem_limit,
        ),
        cost_estimate=cost,
    )(first_tile, ntiles, dst_row, xj, coeff, w_stacked, x_pad, root, bias2)
    return out[:n_nodes]


# ---------------------------------------------------------------------------
# DistMult forward (embedding lookup -> conv1 + ReLU -> dropout -> conv2)
# ---------------------------------------------------------------------------
def init_distmult_params(key, num_entities, num_relations, num_bases, embedding_dim):
    """Deterministic parameter init mirroring the module's shapes."""
    R = num_relations * 2          # RGCNConv is built with num_relations * 2
    D = embedding_dim
    ks = jax.random.split(key, 9)

    std = (2.0 / (num_entities + D)) ** 0.5      # xavier_normal_
    emb_e = std * jax.random.normal(ks[0], (num_entities, D), jnp.float32)
    emb_e = emb_e.at[0].set(0.0)                 # padding_idx=0

    def uniform_init(k, shape, size):            # PyG `uniform(size, tensor)`
        bound = 1.0 / (size ** 0.5)
        return jax.random.uniform(k, shape, jnp.float32, -bound, bound)

    size = num_bases * D
    params = {"emb_e": emb_e}
    for i, name in enumerate(("conv1", "conv2")):
        b = 1 + 4 * i
        params[name] = {
            "basis": uniform_init(ks[b + 0], (num_bases, D, D), size),
            "att":   uniform_init(ks[b + 1], (R, num_bases), size),
            "root":  uniform_init(ks[b + 2], (D, D), size),
            "bias":  uniform_init(ks[b + 3], (D,), size),
        }
    return params


def distmult_forward(params, entity, edge_index, edge_type, edge_norm,
                     *, num_relations, dropout_ratio=0.0, dropout_key=None):
    del num_relations  # relation count is implied by att's first dim
    x = jnp.take(params["emb_e"], jnp.squeeze(entity), axis=0)   # emb_e(entity)

    c1 = params["conv1"]
    x = rgcn_conv(x, edge_index, edge_type, edge_norm,
                  c1["att"], c1["basis"], c1["root"], c1["bias"],
                  apply_relu=True)

    # F.dropout(p=dropout_ratio) — exact no-op for p == 0 (the case exercised here)
    if dropout_ratio > 0.0:
        if dropout_key is None:
            raise ValueError("dropout_ratio > 0 requires an explicit dropout_key")
        keep = jax.random.bernoulli(dropout_key, 1.0 - dropout_ratio, x.shape)
        x = jnp.where(keep, x / (1.0 - dropout_ratio), 0.0)

    c2 = params["conv2"]
    x = rgcn_conv(x, edge_index, edge_type, edge_norm,
                  c2["att"], c2["basis"], c2["root"], c2["bias"],
                  apply_relu=False)
    return x


# ---------------------------------------------------------------------------
# Pure-JAX reference (mirrors the PyTorch module) for numerics validation
# ---------------------------------------------------------------------------
def _rgcn_conv_ref(x, edge_index, edge_type, edge_norm, att, basis, root, bias,
                   *, apply_relu):
    x = x.astype(jnp.float32)
    n_nodes = x.shape[0]
    src, dst = edge_index[0], edge_index[1]
    w = jnp.einsum('rb,bio->rio', att.astype(jnp.float32), basis.astype(jnp.float32))
    msgs = jnp.einsum('ei,eio->eo', x[src], w[edge_type])
    if edge_norm is not None:
        msgs = msgs * edge_norm.astype(jnp.float32)[:, None]
    agg = jnp.zeros((n_nodes, msgs.shape[1]), jnp.float32).at[dst].add(msgs)
    deg = jnp.zeros((n_nodes,), jnp.float32).at[dst].add(1.0)
    agg = agg / jnp.maximum(deg, 1.0)[:, None]
    out = agg + x @ root.astype(jnp.float32) + bias.astype(jnp.float32)[None, :]
    return jnp.maximum(out, 0.0) if apply_relu else out


def _distmult_forward_ref(params, entity, edge_index, edge_type, edge_norm):
    x = jnp.take(params["emb_e"], jnp.squeeze(entity), axis=0)
    c1, c2 = params["conv1"], params["conv2"]
    x = _rgcn_conv_ref(x, edge_index, edge_type, edge_norm, c1["att"], c1["basis"],
                       c1["root"], c1["bias"], apply_relu=True)
    x = _rgcn_conv_ref(x, edge_index, edge_type, edge_norm, c2["att"], c2["basis"],
                       c2["root"], c2["bias"], apply_relu=False)
    return x


if __name__ == "__main__":
    key = jax.random.PRNGKey(0)
    num_entities, num_relations, num_bases, embedding_dim = 16, 4, 2, 32
    n_nodes, n_edges = 12, 24

    k1, k2, k3, k4, k5 = jax.random.split(key, 5)
    params = init_distmult_params(k1, num_entities, num_relations,
                                  num_bases, embedding_dim)
    entity = jax.random.randint(k2, (n_nodes, 1), 0, num_entities, jnp.int32)
    edge_index = jax.random.randint(k3, (2, n_edges), 0, n_nodes, jnp.int32)
    edge_type = jax.random.randint(k4, (n_edges,), 0, num_relations * 2, jnp.int32)
    edge_norm = jax.random.uniform(k5, (n_edges,), jnp.float32)

    out = distmult_forward(params, entity, edge_index, edge_type, edge_norm,
                           num_relations=num_relations, dropout_ratio=0.0)
    out = jax.block_until_ready(out)

    ref = jax.block_until_ready(
        _distmult_forward_ref(params, entity, edge_index, edge_type, edge_norm))

    assert out.shape == (n_nodes, embedding_dim) and out.dtype == jnp.float32
    assert jnp.allclose(out, ref, atol=2e-4, rtol=2e-3), (
        "max abs err = %f" % float(jnp.max(jnp.abs(out - ref))))
    print("KERNEL_OK")
</pallas_src>

<mosaic_0001>
module attributes {stable_mosaic.version = 11 : i64} {
  func.func @_rgcn_layer_kernel(%arg0: i32, %arg1: i32, %arg2: memref<2xi32, #tpu.memory_space<smem>>, %arg3: memref<2xi32, #tpu.memory_space<smem>>, %arg4: memref<1x128xi32, #tpu.memory_space<vmem>>, %arg5: memref<128x32xf32, #tpu.memory_space<vmem>>, %arg6: memref<128x2xf32, #tpu.memory_space<vmem>>, %arg7: memref<32x64xf32, #tpu.memory_space<vmem>>, %arg8: memref<8x32xf32, #tpu.memory_space<vmem>>, %arg9: memref<32x32xf32, #tpu.memory_space<vmem>>, %arg10: memref<1x32xf32, #tpu.memory_space<vmem>>, %arg11: memref<8x32xf32, #tpu.memory_space<vmem>>) attributes {dimension_semantics = [#tpu.dimension_semantics<parallel>, #tpu.dimension_semantics<arbitrary>], iteration_bounds = array<i64: 2, 1>, scalar_prefetch = 2 : i64, scratch_operands = 0 : i64, tpu.core_type = #tpu.core_type<tc>, window_params = [{transform_indices = @transform_0, window_bounds = array<i64: 1, 128>}, {transform_indices = @transform_1, window_bounds = array<i64: 128, 32>}, {transform_indices = @transform_2, window_bounds = array<i64: 128, 2>}, {pipeline_mode = #tpu.pipeline_mode<synchronous>, transform_indices = @transform_3, window_bounds = array<i64: 32, 64>}, {transform_indices = @transform_4, window_bounds = array<i64: 8, 32>}, {pipeline_mode = #tpu.pipeline_mode<synchronous>, transform_indices = @transform_5, window_bounds = array<i64: 32, 32>}, {pipeline_mode = #tpu.pipeline_mode<synchronous>, transform_indices = @transform_6, window_bounds = array<i64: 1, 32>}, {transform_indices = @transform_7, window_bounds = array<i64: 8, 32>}]} {
    %c0_i32 = arith.constant 0 : i32
    %0 = arith.cmpi eq, %arg1, %c0_i32 : i32
    %1 = arith.extui %0 : i1 to i32
    %c0_i32_0 = arith.constant 0 : i32
    %2 = arith.cmpi ne, %1, %c0_i32_0 : i32
    scf.if %2 {
      %cst = arith.constant 0.000000e+00 : f32
      %11 = vector.broadcast %cst : f32 to vector<8x32xf32>
      %c0 = arith.constant 0 : index
      %c0_4 = arith.constant 0 : index
      %12 = vector.load %arg11[%c0, %c0_4] : memref<8x32xf32, #tpu.memory_space<vmem>>, vector<8x32xf32>
      tpu.vector_store %arg11[%c0, %c0_4], %11 {strides = array<i32>} : memref<8x32xf32, #tpu.memory_space<vmem>>, vector<8x32xf32>,
    } else {
    }
    %3 = arith.index_cast %arg0 : i32 to index
    %4 = memref.load %arg3[%3] : memref<2xi32, #tpu.memory_space<smem>>
    %5 = arith.cmpi slt, %arg1, %4 : i32
    %6 = arith.extui %5 : i1 to i32
    %c0_i32_1 = arith.constant 0 : i32
    %7 = arith.cmpi ne, %6, %c0_i32_1 : i32
    scf.if %7 {
      %c0 = arith.constant 0 : index
      %c0_4 = arith.constant 0 : index
      %11 = vector.load %arg5[%c0, %c0_4] : memref<128x32xf32, #tpu.memory_space<vmem>>, vector<128x32xf32>
      %c0_5 = arith.constant 0 : index
      %c0_6 = arith.constant 0 : index
      %12 = vector.load %arg7[%c0_5, %c0_6] : memref<32x64xf32, #tpu.memory_space<vmem>>, vector<32x64xf32>
      %cst = arith.constant dense<0.000000e+00> : vector<128x64xf32>
      %13 = tpu.matmul %11, %12, %cst {dimension_numbers = #tpu.dot_dimension_numbers<[1], [0], [0], [1], [0, 0, 1, 1], [], []>} : vector<128x32xf32>, vector<32x64xf32>, vector<128x64xf32> -> vector<128x64xf32>
      %c0_7 = arith.constant 0 : index
      %c0_8 = arith.constant 0 : index
      %14 = vector.load %arg6[%c0_7, %c0_8] : memref<128x2xf32, #tpu.memory_space<vmem>>, vector<128x2xf32>
      %15 = vector.extract_strided_slice %14 {offsets = [0, 0], sizes = [128, 1], strides = [1, 1]} : vector<128x2xf32> to vector<128x1xf32>
      %16 = vector.extract_strided_slice %13 {offsets = [0, 0], sizes = [128, 32], strides = [1, 1]} : vector<128x64xf32> to vector<128x32xf32>
      %17 = vector.broadcast %15 : vector<128x1xf32> to vector<128x32xf32>
      %18 = arith.mulf %17, %16 : vector<128x32xf32>
      %19 = vector.extract_strided_slice %14 {offsets = [0, 1], sizes = [128, 1], strides = [1, 1]} : vector<128x2xf32> to vector<128x1xf32>
      %20 = vector.extract_strided_slice %13 {offsets = [0, 32], sizes = [128, 32], strides = [1, 1]} : vector<128x64xf32> to vector<128x32xf32>
      %21 = vector.broadcast %19 : vector<128x1xf32> to vector<128x32xf32>
      %22 = arith.mulf %21, %20 : vector<128x32xf32>
      %23 = arith.addf %18, %22 : vector<128x32xf32>
      %24 = tpu.iota {dimensions = array<i32: 0>} : vector<8x128xi32>
      %c8_i32 = arith.constant 8 : i32
      %25 = arith.muli %arg0, %c8_i32 : i32
      %26 = vector.broadcast %25 : i32 to vector<8x128xi32>
      %27 = arith.addi %24, %26 : vector<8x128xi32>
      %c0_9 = arith.constant 0 : index
      %c0_10 = arith.constant 0 : index
      %28 = vector.load %arg4[%c0_9, %c0_10] : memref<1x128xi32, #tpu.memory_space<vmem>>, vector<1x128xi32>
      %29 = vector.broadcast %28 : vector<1x128xi32> to vector<8x128xi32>
      %30 = arith.cmpi eq, %27, %29 : vector<8x128xi32>
      %31 = arith.extui %30 : vector<8x128xi1> to vector<8x128xi32>
      %32 = arith.sitofp %31 : vector<8x128xi32> to vector<8x128xf32>
      %c0_11 = arith.constant 0 : index
      %c0_12 = arith.constant 0 : index
      %33 = vector.load %arg11[%c0_11, %c0_12] : memref<8x32xf32, #tpu.memory_space<vmem>>, vector<8x32xf32>
      %cst_13 = arith.constant dense<0.000000e+00> : vector<8x32xf32>
      %34 = tpu.matmul %32, %23, %cst_13 {dimension_numbers = #tpu.dot_dimension_numbers<[1], [0], [0], [1], [0, 0, 1, 1], [], []>} : vector<8x128xf32>, vector<128x32xf32>, vector<8x32xf32> -> vector<8x32xf32>
      %35 = arith.addf %33, %34 : vector<8x32xf32>
      %c0_14 = arith.constant 0 : index
      %c0_15 = arith.constant 0 : index
      %36 = vector.load %arg11[%c0_14, %c0_15] : memref<8x32xf32, #tpu.memory_space<vmem>>, vector<8x32xf32>
      tpu.vector_store %arg11[%c0_14, %c0_15], %35 {strides = array<i32>} : memref<8x32xf32, #tpu.memory_space<vmem>>, vector<8x32xf32>,
    } else {
    }
    %c0_i32_2 = arith.constant 0 : i32
    %8 = arith.cmpi eq, %arg1, %c0_i32_2 : i32
    %9 = arith.extui %8 : i1 to i32
    %c0_i32_3 = arith.constant 0 : i32
    %10 = arith.cmpi ne, %9, %c0_i32_3 : i32
    scf.if %10 {
      %c0 = arith.constant 0 : index
      %c0_4 = arith.constant 0 : index
      %11 = vector.load %arg11[%c0, %c0_4] : memref<8x32xf32, #tpu.memory_space<vmem>>, vector<8x32xf32>
      %c0_5 = arith.constant 0 : index
      %c0_6 = arith.constant 0 : index
      %12 = vector.load %arg8[%c0_5, %c0_6] : memref<8x32xf32, #tpu.memory_space<vmem>>, vector<8x32xf32>
      %c0_7 = arith.constant 0 : index
      %c0_8 = arith.constant 0 : index
      %13 = vector.load %arg9[%c0_7, %c0_8] : memref<32x32xf32, #tpu.memory_space<vmem>>, vector<32x32xf32>
      %cst = arith.constant dense<0.000000e+00> : vector<8x32xf32>
      %14 = tpu.matmul %12, %13, %cst {dimension_numbers = #tpu.dot_dimension_numbers<[1], [0], [0], [1], [0, 0, 1, 1], [], []>} : vector<8x32xf32>, vector<32x32xf32>, vector<8x32xf32> -> vector<8x32xf32>
      %15 = arith.addf %11, %14 : vector<8x32xf32>
      %c0_9 = arith.constant 0 : index
      %c0_10 = arith.constant 0 : index
      %16 = vector.load %arg10[%c0_9, %c0_10] : memref<1x32xf32, #tpu.memory_space<vmem>>, vector<1x32xf32>
      %17 = vector.broadcast %16 : vector<1x32xf32> to vector<8x32xf32>
      %18 = arith.addf %15, %17 : vector<8x32xf32>
      %cst_11 = arith.constant 0.000000e+00 : f32
      %19 = vector.broadcast %cst_11 : f32 to vector<8x32xf32>
      %20 = arith.maximumf %18, %19 : vector<8x32xf32>
      %c0_12 = arith.constant 0 : index
      %c0_13 = arith.constant 0 : index
      %21 = vector.load %arg11[%c0_12, %c0_13] : memref<8x32xf32, #tpu.memory_space<vmem>>, vector<8x32xf32>
      tpu.vector_store %arg11[%c0_12, %c0_13], %20 {strides = array<i32>} : memref<8x32xf32, #tpu.memory_space<vmem>>, vector<8x32xf32>,
    } else {
    }
    return
  }
  func.func @transform_0(%arg0: i32, %arg1: i32, %arg2: memref<2xi32, #tpu.memory_space<smem>>, %arg3: memref<2xi32, #tpu.memory_space<smem>>) -> (i32, i32) {
    %0 = arith.index_cast %arg0 : i32 to index
    %1 = memref.load %arg2[%0] : memref<2xi32, #tpu.memory_space<smem>>
    %2 = arith.index_cast %arg0 : i32 to index
    %3 = memref.load %arg3[%2] : memref<2xi32, #tpu.memory_space<smem>>
    %c1_i32 = arith.constant 1 : i32
    %4 = arith.subi %3, %c1_i32 : i32
    %c0_i32 = arith.constant 0 : i32
    %5 = arith.maxsi %4, %c0_i32 : i32
    %6 = arith.minsi %arg1, %5 : i32
    %7 = arith.addi %1, %6 : i32
    %c0_i32_0 = arith.constant 0 : i32
    %c0_i32_1 = arith.constant 0 : i32
    return %c0_i32_0, %7 : i32, i32
  }
  func.func @transform_1(%arg0: i32, %arg1: i32, %arg2: memref<2xi32, #tpu.memory_space<smem>>, %arg3: memref<2xi32, #tpu.memory_space<smem>>) -> (i32, i32) {
    %0 = arith.index_cast %arg0 : i32 to index
    %1 = memref.load %arg2[%0] : memref<2xi32, #tpu.memory_space<smem>>
    %2 = arith.index_cast %arg0 : i32 to index
    %3 = memref.load %arg3[%2] : memref<2xi32, #tpu.memory_space<smem>>
    %c1_i32 = arith.constant 1 : i32
    %4 = arith.subi %3, %c1_i32 : i32
    %c0_i32 = arith.constant 0 : i32
    %5 = arith.maxsi %4, %c0_i32 : i32
    %6 = arith.minsi %arg1, %5 : i32
    %7 = arith.addi %1, %6 : i32
    %c0_i32_0 = arith.constant 0 : i32
    %c0_i32_1 = arith.constant 0 : i32
    return %7, %c0_i32_0 : i32, i32
  }
  func.func @transform_2(%arg0: i32, %arg1: i32, %arg2: memref<2xi32, #tpu.memory_space<smem>>, %arg3: memref<2xi32, #tpu.memory_space<smem>>) -> (i32, i32) {
    %0 = arith.index_cast %arg0 : i32 to index
    %1 = memref.load %arg2[%0] : memref<2xi32, #tpu.memory_space<smem>>
    %2 = arith.index_cast %arg0 : i32 to index
    %3 = memref.load %arg3[%2] : memref<2xi32, #tpu.memory_space<smem>>
    %c1_i32 = arith.constant 1 : i32
    %4 = arith.subi %3, %c1_i32 : i32
    %c0_i32 = arith.constant 0 : i32
    %5 = arith.maxsi %4, %c0_i32 : i32
    %6 = arith.minsi %arg1, %5 : i32
    %7 = arith.addi %1, %6 : i32
    %c0_i32_0 = arith.constant 0 : i32
    %c0_i32_1 = arith.constant 0 : i32
    return %7, %c0_i32_0 : i32, i32
  }
  func.func @transform_3(%arg0: i32, %arg1: i32, %arg2: memref<2xi32, #tpu.memory_space<smem>>, %arg3: memref<2xi32, #tpu.memory_space<smem>>) -> (i32, i32) {
    %c0_i32 = arith.constant 0 : i32
    %c0_i32_0 = arith.constant 0 : i32
    %c0_i32_1 = arith.constant 0 : i32
    return %c0_i32, %c0_i32_0 : i32, i32
  }
  func.func @transform_4(%arg0: i32, %arg1: i32, %arg2: memref<2xi32, #tpu.memory_space<smem>>, %arg3: memref<2xi32, #tpu.memory_space<smem>>) -> (i32, i32) {
    %c0_i32 = arith.constant 0 : i32
    %c0_i32_0 = arith.constant 0 : i32
    return %arg0, %c0_i32 : i32, i32
  }
  func.func @transform_5(%arg0: i32, %arg1: i32, %arg2: memref<2xi32, #tpu.memory_space<smem>>, %arg3: memref<2xi32, #tpu.memory_space<smem>>) -> (i32, i32) {
    %c0_i32 = arith.constant 0 : i32
    %c0_i32_0 = arith.constant 0 : i32
    %c0_i32_1 = arith.constant 0 : i32
    return %c0_i32, %c0_i32_0 : i32, i32
  }
  func.func @transform_6(%arg0: i32, %arg1: i32, %arg2: memref<2xi32, #tpu.memory_space<smem>>, %arg3: memref<2xi32, #tpu.memory_space<smem>>) -> (i32, i32) {
    %c0_i32 = arith.constant 0 : i32
    %c0_i32_0 = arith.constant 0 : i32
    %c0_i32_1 = arith.constant 0 : i32
    return %c0_i32, %c0_i32_0 : i32, i32
  }
  func.func @transform_7(%arg0: i32, %arg1: i32, %arg2: memref<2xi32, #tpu.memory_space<smem>>, %arg3: memref<2xi32, #tpu.memory_space<smem>>) -> (i32, i32) {
    %c0_i32 = arith.constant 0 : i32
    %c0_i32_0 = arith.constant 0 : i32
    return %arg0, %c0_i32 : i32, i32
  }
}

</mosaic_0001>

<bundles_post_ra>
// kernel: tpu_custom_call.1
= control target key start
LH: loop header
LB: loop body
LE: loop exit
PB: predicated region body
PF: predicated region fallthrough
CT: control target
= control target key end

     0   :  { %s2083_s0 = inlined_call_operand.vmem [shape: s32[2], index: 0, kind: input, shape index: {}]   ;;  %s2084_s2 = inlined_call_operand.vmem [shape: s32[1,128], index: 2, kind: input, shape index: {}]   ;;  %s2085_s3 = inlined_call_operand.vmem [shape: f32[128,32], index: 3, kind: input, shape index: {}]   ;;  %s2086_s4 = inlined_call_operand.vmem [shape: f32[128,2], index: 4, kind: input, shape index: {}]   ;;  %s2087_s5 = inlined_call_operand.vmem [shape: f32[32,64], index: 5, kind: input, shape index: {}]   ;;  %s2088_s6 = inlined_call_operand.vmem [shape: f32[16,32], index: 6, kind: input, shape index: {}]   ;;  %s2089_s7 = inlined_call_operand.vmem [shape: f32[32,32], index: 7, kind: input, shape index: {}]   ;;  %s2090_s8 = inlined_call_operand.vmem [shape: f32[1,32], index: 8, kind: input, shape index: {}]   ;;  %s2091_s9 = inlined_call_operand.hbm [shape: f32[16,32], index: 9, kind: output, shape index: {}]   ;;  %s2092_s1 = inlined_call_operand.vmem [shape: s32[2], index: 1, kind: input, shape index: {}]  }
   0x1   :  { %2099 = sst [smem:[#allocation15_spill]] %s2088_s6  ;;  %s14_s11 = sshll.u32 %s2083_s0, 4  ;;  %s15_s11 = int_to_ptr.vmem [resolvable:$true] %s14_s11 }
   0x2   :  { %s18_s14 = sshll.u32 %s2092_s1, 4  ;;  %s1589_s15 = scalar_lea.vmem %s15_s11, 16  ;;  %s19_s14 = int_to_ptr.vmem [resolvable:$true] %s18_s14 }
   0x3   :  { %p1590_p0 = scmp.ne.s32.totalorder %s15_s11, %s1589_s15  ;;  %p1594_p1 = scmp.lt.s32.totalorder %s15_s11, %s15_s11 }
   0x4   :  { %p1595_p2 = scmp.lt.s32.totalorder %s1589_s15, %s1589_s15 }
   0x6   :  { %p1596_p3 = por %p1595_p2, %p1594_p1 }
   0x8   :  { %p1597_p4 = pnand %p1596_p3, %p1590_p0 }
   0xa   :  { %1600 = shalt.err (!%p1597_p4)  }
   0xb   :  { %s1693_s16 = smov [#allocation3]   ;;  %s1601_s17 = scalar_lea.vmem %s19_s14, 16 }
   0xc   :  { %17 = dma.vmem_to_smem %s15_s11, 16, %s1693_s16, [#allocation2] }
   0xd   :  { %p1602_p5 = scmp.ne.s32.totalorder %s19_s14, %s1601_s17  ;;  %p1606_p6 = scmp.lt.s32.totalorder %s19_s14, %s19_s14 }
   0xe   :  { %p1607_p7 = scmp.lt.s32.totalorder %s1601_s17, %s1601_s17 }
  0x10   :  { %p1608_p8 = por %p1607_p7, %p1606_p6 }
  0x12   :  { %p1609_p9 = pnand %p1608_p8, %p1602_p5 }
  0x14   :  { %1612 = shalt.err (!%p1609_p9)  }
  0x15   :  { %s1694_s0 = smov [#allocation4]  }
  0x16   :  { %21 = dma.vmem_to_smem %s19_s14, 16, %s1694_s0, [#allocation2] }
  0x17   :  { %1663 = dma.done.wait [#allocation2], 32 }
  0x18   :  { %1664 = vsyncadd [#allocation2], 4294967264 }
  0x19   :  { %23 = sfence }
  0x1a   :  { %24 = vsyncpa [#allocation6], 0 }
  0x1b   :  { %26 = vsyncpa [#allocation6 + $0x1], 0  ;;  %s1760_s1 = smov 0   ;;  %s1762_s18 = smov 0  }
  0x1c   :  { %s1764_s19 = smov 0   ;;  %s1766_s20 = smov 0  }
  0x1d   :  { %s1768_s21 = smov 0   ;;  %s1770_s22 = smov 0  }
  0x1e LB: > { %2100 = sst [smem:[#allocation9_spill]] %s1671_s1  ;;  %s1315_s23 = sadd.s32 4294967295, %s1691_s22   ;;  %s1691_s22 = sphi %s1770_s22, %s32_s22   ;;  %s1687_s21 = sphi %s1768_s21, %s2115_s21   ;;  %s1683_s20 = sphi %s1766_s20, %s2114_s20   ;;  %s1679_s19 = sphi %s1764_s19, %s2113_s19   ;;  %s1675_s18 = sphi %s1762_s18, %s2117_s18   ;;  %s1671_s1 = sphi %s1760_s1, %s2116_s1  }
  0x1f   : > { %2101 = sst [smem:[#allocation10_spill]] %s1679_s19  ;;  %s1316_s24 = sadd.s32 4294967294, %s1691_s22  }
  0x20   : > { %2102 = sst [smem:[#allocation11_spill]] %s1687_s21  ;;  %s44_s25 = sadd.s32 1, %s1687_s21 }
  0x21   : > { %s266_s26 = sadd.s32 1, %s1679_s19  ;;  %p46_p10 = scmp.ge.s32.totalorder %s44_s25, 2 }
  0x22   : > { %p276_p11 = scmp.ne.s32.totalorder %s1679_s19, %s1675_s18  ;;  %p277_p12 = scmp.eq.s32.totalorder %s1315_s23, 1 }
  0x23   : > { %p282_p13 = scmp.ne.s32.totalorder %s1675_s18, %s1671_s1  ;;  %s2119_s25 = smov (%p46_p10, %s44_s25), 0 }
  0x24   : > { %2103 = sst [smem:[#allocation12_spill]] %s2119_s25  ;;  %p1800_p0 = por %p277_p12, %p276_p11 }
  0x25   : > { %p283_p1 = scmp.eq.s32.totalorder %s1316_s24, 1  ;;  %s263_s28 = ssub.s32 %s1687_s21, %s2119_s25 }
  0x26   : > { %p1331_p2 = scmp.ge.s32.totalorder %s1691_s22, 1  ;;  %p264_p3 = scmp.eq.s32.totalorder %s263_s28, 0 }
  0x27   : > { %p1807_p4 = por %p283_p1, %p282_p13  ;;  %p389_p5 = scmp.lt.s32.totalorder %s1691_s22, 3 }
  0x28   : > { %s1813_s30 = scalar_select %p264_p3, %s1679_s19, %s266_s26  }
  0x29   : > { %s2105_s29 = scalar_select %p1807_p4, 1, 0 }
  0x2a   : > { %2107 = sst [smem:[#allocation14_spill]] %s1813_s30  ;;  %p390_p6 = pnand %p1331_p2, %p389_p5 }
  0x2b   : > { %2106 = sst [smem:[#allocation13_spill]] %s2105_s29  ;;  %s2093_s10 = sand.u32 (!%p390_p6), 1, %s1675_s18  }
  0x2c   : > { %393 = sbr.rel (%p390_p6) target bundleno = 879 (0x36f), region = 48  ;;  %s1332_s11 = sshll.u32 (!%p390_p6), %s2093_s10, 3 }
  0x2d   : > { %s458_s12 = sld [smem:[#allocation4 + %s1683_s20]] (!%p390_p6)  ;;  %p520_p7 = scmp.lt.s32.totalorder (!%p390_p6), %s1683_s20, 1 }
  0x2e   : > { %s457_s13 = sld [smem:[#allocation3 + %s1683_s20]] (!%p390_p6)  ;;  %s1822_s15 = scalar_lea.vmem (!%p390_p6), [#allocation5], %s1332_s11 }
  0x2f   : > { %s477_s14 = sld [smem:[#allocation4 + %s1683_s20]] (!%p390_p6) }
  0x30   : > { %s476_s16 = sld [smem:[#allocation3 + %s1683_s20]] (!%p390_p6) }
  0x31   : > { %vm528_vm0 = vcmask 261120   ;;  %v1695_v0 = vmov 0.0   ;;  %s499_s17 = sld [smem:[#allocation4 + %s1683_s20]] }
  0x32   : > { %529 = vst.msk [vmem:[%s1822_s15] sm:$0xff] %vm528_vm0, %v1695_v0  ;;  %s521_s0 = scalar_select %p520_p7, %s1683_s20, 1 }
  0x33   : > { %s1333_s23 = sadd.s32 4294967295, %s458_s12  ;;  %s1831_s24 = sld [smem:[#allocation4 + %s1683_s20]] }
  0x34   : > { %p460_p8 = scmp.gt.s32.totalorder %s1333_s23, 0  ;;  %s1343_s26 = sshll.u32 %s521_s0, 3 }
  0x35   : > { %s1335_s28 = sadd.s32 4294967295, %s477_s14  ;;  %s2108_s6 = sld [smem:[#allocation15_spill]] }
  0x36   : > { %s2121_s23 = smov (!%p460_p8, %s1333_s23), 0  ;;  %p479_p9 = scmp.gt.s32.totalorder %s1335_s28, 0 }
  0x37   : > { %s1339_s21 = sadd.s32 4294967295, %s499_s17  ;;  %s2123_s23 = smov (%p460_p8, %s2121_s23), 0 }
  0x38   : > { %s2125_s28 = smov (!%p479_p9, %s1335_s28), 0  ;;  %s464_s30 = sadd.s32 %s2123_s23, %s457_s13 }
  0x39   : > { %s498_s19 = sld [smem:[#allocation3 + %s1683_s20]]  ;;  %p465_p10 = scmp.lt.s32.totalorder %s464_s30, 0 }
  0x3a   : > { %p501_p11 = scmp.gt.s32.totalorder %s1339_s21, 0  ;;  %s2127_s28 = smov (%p479_p9, %s2125_s28), 0 }
  0x3b   : > { %s1836_s11 = scalar_lea.vmem %s2108_s6, %s1343_s26  ;;  %s2129_s30 = smov (!%p465_p10, %s464_s30), 0 }
  0x3c   : > { %s483_s12 = sadd.s32 %s2127_s28, %s476_s16  ;;  %s467_s25 = scalar_lea.vmem %s2084_s2, %s2129_s30 }
  0x3d   : > { %s1337_s10 = sshll.u32 %s483_s12, 4  ;;  %s2131_s21 = smov (!%p501_p11, %s1339_s21), 0 }
  0x3e   : > { %p485_p12 = scmp.lt.s32.totalorder %s1337_s10, 15  ;;  %s2135_s21 = smov (%p501_p11, %s2131_s21), 0 }
  0x3f   : > { %s505_s6 = sadd.s32 %s2135_s21, %s498_s19  ;;  %p1345_p1 = scmp.le.s32.totalorder %s1831_s24, 0 }
  0x40   : > { %s2133_s10 = smov (!%p485_p12, %s1337_s10), 15  ;;  %s1341_s29 = sshll.u32 %s505_s6, 4 }
  0x41   : > { %s1338_s17 = sshll.u32 %s2133_s10, 3  ;;  %p507_p13 = scmp.lt.s32.totalorder %s1341_s29, 15 }
  0x42   : > { %s1848_s23 = scalar_lea.vmem %s2085_s3, %s1338_s17  ;;  %534 = sbr.rel (%p1345_p1) target bundleno = 659 (0x293), region = 56 }
  0x43   : > { %s2137_s29 = smov (!%p507_p13, %s1341_s29), 15  ;;  %s1698_s10 = smov (!%p1345_p1), 96  }
  0x44   : > { %s1342_s16 = sshll.u32 %s2137_s29, 3  ;;  %s1362_s17 = sshll.u32 (!%p1345_p1), %s1683_s20, 3 }
  0x45   : > { %s1853_s14 = scalar_lea.vmem %s2086_s4, %s1342_s16 }
  0x47   : > { %v554_v1 = vld [vmem:[%s2087_s5 + $0x18] sm:$0xff]  ;;  %v553_v3 = vld [vmem:[%s2087_s5 + $0x10] sm:$0xff]  ;;  %v1696_v4 = vmov 1   ;;  %v552_v5 = vld [vmem:[%s2087_s5 + $0x8] sm:$0xff]  ;;  %v1697_v36 = vmov 0   ;;  %vm1700_vm1 = vmmov 0  }
  0x48   : > { %v1860_v2 = vld [vmem:[%s1853_s14 + $0x78] sm:$0xff]  ;;  %1584 = vset.pattern.permute.xlu0 %v1696_v4  ;;  %1441 = vmatprep.subr.mxu0 %v554_v1  ;;  %v535_v6 = vld [vmem:[%s1848_s23] sm:$0xff]  ;;  %v1872_v7 = vld [vmem:[%s1853_s14 + $0x70] sm:$0xff] }
  0x49   : > { %922 = vperm.xlu0 %1584, %v1860_v2   ;;  %1442 = vmatpush3.msra.mxu0 %v554_v1  ;;  %v551_v8 = vld [vmem:[%s2087_s5] sm:$0xff]  ;;  %v536_v9 = vld [vmem:[%s1848_s23 + $0x8] sm:$0xff]  ;;  %v760_v10 = vld [vmem:[%s1853_s14 + $0x58] sm:$0xff] }
  0x4a   : > { %1443 = vmatprep.subr.mxu0 %v553_v3  ;;  %1449 = vmatprep.mubr.msk.f32.mxu0 %vm528_vm0, %v535_v6  ;;  %v537_v11 = vld [vmem:[%s1848_s23 + $0x10] sm:$0xff]  ;;  %v538_v12 = vld [vmem:[%s1848_s23 + $0x18] sm:$0xff]  ;;  %v762_v13 = vld [vmem:[%s1853_s14 + $0x68] sm:$0xff]  ;;  %v1699_v6 = vmov 0.0  }
  0x4b   : > { %1444 = vmatpush3.msra.mxu0 %v553_v3  ;;  %1585 = vset.pattern.permute.xlu1 %v1696_v4  ;;  %v758_v14 = vld [vmem:[%s1853_s14 + $0x48] sm:$0xff]  ;;  %v539_v15 = vld [vmem:[%s1848_s23 + $0x20] sm:$0xff]  ;;  %v756_v18 = vld [vmem:[%s1853_s14 + $0x38] sm:$0xff] }
  0x4c   : > { %1445 = vmatprep.subr.mxu0 %v552_v5  ;;  %914 = vperm.xlu1 %1585, %v762_v13   ;;  %v540_v16 = vld [vmem:[%s1848_s23 + $0x28] sm:$0xff]  ;;  %v761_v17 = vld [vmem:[%s1853_s14 + $0x60] sm:$0xff]  ;;  %v541_v19 = vld [vmem:[%s1848_s23 + $0x30] sm:$0xff] }
  0x4d   : > { %918 = vperm.xlu0 %1584, %v1872_v7   ;;  %1446 = vmatpush3.msra.mxu0 %v552_v5  ;;  %v542_v20 = vld [vmem:[%s1848_s23 + $0x38] sm:$0xff]  ;;  %v759_v21 = vld [vmem:[%s1853_s14 + $0x50] sm:$0xff]  ;;  %v754_v22 = vld [vmem:[%s1853_s14 + $0x28] sm:$0xff] }
  0x4e   : > { %1447 = vmatprep.subr.mxu0 %v551_v8  ;;  %v543_v23 = vld [vmem:[%s1848_s23 + $0x40] sm:$0xff]  ;;  %v544_v24 = vld [vmem:[%s1848_s23 + $0x48] sm:$0xff]  ;;  %v752_v26 = vld [vmem:[%s1853_s14 + $0x18] sm:$0xff]  ;;  %1473 = vmatprep.subr.mxu1 %v1699_v6 }
  0x4f   : > { %1448 = vmatpush3.msra.mxu0 %v551_v8  ;;  %v757_v25 = vld [vmem:[%s1853_s14 + $0x40] sm:$0xff]  ;;  %v545_v27 = vld [vmem:[%s1848_s23 + $0x50] sm:$0xff]  ;;  %v546_v28 = vld [vmem:[%s1848_s23 + $0x58] sm:$0xff]  ;;  %1505 = vmatprep.mubr.msk.f32.mxu1 %vm1700_vm1, %v1699_v6 }
  0x50   : > { %1450 = vmatmul.mubr.msk.f32.vlgmr.msra.gmra.mxu0 %vm528_vm0, %v536_v9  ;;  %910 = vperm.xlu1 %1585, %v761_v17   ;;  %v755_v29 = vld [vmem:[%s1853_s14 + $0x30] sm:$0xff]  ;;  %v750_v30 = vld [vmem:[%s1853_s14 + $0x8] sm:$0xff]  ;;  %v547_v31 = vld [vmem:[%s1848_s23 + $0x60] sm:$0xff] }
  0x51   : > { %906 = vperm.xlu0 %1584, %v760_v10   ;;  %1452 = vmatprep.mubr.msk.f32.mxu0 %vm528_vm0, %v537_v11  ;;  %v753_v32 = vld [vmem:[%s1853_s14 + $0x20] sm:$0xff]  ;;  %v548_v33 = vld [vmem:[%s1848_s23 + $0x68] sm:$0xff]  ;;  %v549_v34 = vld [vmem:[%s1848_s23 + $0x70] sm:$0xff] }
  0x52   : > { %v751_v35 = vld [vmem:[%s1853_s14 + $0x10] sm:$0xff]  ;;  %v550_v37 = vld [vmem:[%s1848_s23 + $0x78] sm:$0xff]  ;;  %v749_v38 = vld [vmem:[%s1853_s14] sm:$0xff] }
  0x54   : > { %1453 = vmatmul.mubr.msk.f32.gmra.mxu0 %vm528_vm0, %v538_v12  ;;  %902 = vperm.xlu1 %1585, %v759_v21  }
  0x55   : > { %898 = vperm.xlu0 %1584, %v758_v14   ;;  %1455 = vmatprep.mubr.msk.f32.mxu0 %vm528_vm0, %v539_v15 }
  0x58   : > { %1456 = vmatmul.mubr.msk.f32.gmra.mxu0 %vm528_vm0, %v540_v16  ;;  %894 = vperm.xlu1 %1585, %v757_v25  }
  0x59   : > { %890 = vperm.xlu0 %1584, %v756_v18   ;;  %1458 = vmatprep.mubr.msk.f32.mxu0 %vm528_vm0, %v541_v19 }
  0x5c   : > { %1459 = vmatmul.mubr.msk.f32.gmra.mxu0 %vm528_vm0, %v542_v20  ;;  %886 = vperm.xlu1 %1585, %v755_v29  }
  0x5d   : > { %882 = vperm.xlu0 %1584, %v754_v22   ;;  %1461 = vmatprep.mubr.msk.f32.mxu0 %vm528_vm0, %v543_v23 }
  0x60   : > { %1462 = vmatmul.mubr.msk.f32.gmra.mxu0 %vm528_vm0, %v544_v24  ;;  %878 = vperm.xlu1 %1585, %v753_v32  }
  0x61   : > { %874 = vperm.xlu0 %1584, %v752_v26   ;;  %1464 = vmatprep.mubr.msk.f32.mxu0 %vm528_vm0, %v545_v27 }
  0x64   : > { %1465 = vmatmul.mubr.msk.f32.gmra.mxu0 %vm528_vm0, %v546_v28  ;;  %870 = vperm.xlu1 %1585, %v751_v35  }
  0x65   : > { %866 = vperm.xlu0 %1584, %v750_v30   ;;  %1467 = vmatprep.mubr.msk.f32.mxu0 %vm528_vm0, %v547_v31 }
  0x68   : > { %1468 = vmatmul.mubr.msk.f32.gmra.mxu0 %vm528_vm0, %v548_v33  ;;  %862 = vperm.xlu1 %1585, %v749_v38  }
  0x69   : > { %1586 = vset.pattern.permute.xlu0 %v1697_v36  ;;  %1470 = vmatprep.mubr.msk.f32.mxu0 %vm528_vm0, %v549_v34 }
  0x6a   : > { %842 = vperm.xlu0 %1586, %v1860_v2  }
  0x6c   : > { %1471 = vmatmul.mubr.msk.f32.gmra.mxu0 %vm528_vm0, %v550_v37  ;;  %1587 = vset.pattern.permute.xlu1 %v1697_v36 }
  0x6d   : > { %837 = vperm.xlu1 %1587, %v1872_v7  }
  0x6e   : > { %827 = vperm.xlu0 %1586, %v761_v17  }
  0x71   : > { %832 = vperm.xlu1 %1587, %v762_v13  }
  0x72   : > { %822 = vperm.xlu0 %1586, %v760_v10  }
  0x76   : > { %817 = vperm.xlu0 %1586, %v759_v21  }
  0x7a   : > { %812 = vperm.xlu0 %1586, %v758_v14  }
  0x7e   : > { %807 = vperm.xlu0 %1586, %v757_v25  }
  0x82   : > { %802 = vperm.xlu0 %1586, %v756_v18  }
  0x86   : > { %797 = vperm.xlu0 %1586, %v755_v29  }
  0x8a   : > { %792 = vperm.xlu0 %1586, %v754_v22  }
  0x8e   : > { %787 = vperm.xlu0 %1586, %v753_v32  }
  0x92   : > { %782 = vperm.xlu0 %1586, %v752_v26  }
  0x96   : > { %777 = vperm.xlu0 %1586, %v751_v35  }
  0x9a   : > { %772 = vperm.xlu0 %1586, %v750_v30  }
  0x9e   : > { %767 = vperm.xlu0 %1586, %v749_v38  }
  0xa2   : > { %1588 = vset.pattern.permute.xlu0 %v1696_v4 }
  0xc4   : > { %v923_v45 = vpop.permute.xlu0 %922 }
  0xc7   : > { %v915_v39 = vpop.permute.xlu1 %914 }
  0xc8   : > { %v919_v49 = vpop.permute.xlu0 %918 }
  0xcb   : > { %v911_v40 = vpop.permute.xlu1 %910 }
  0xcc   : > { %v907_v55 = vpop.permute.xlu0 %906 }
  0xcf   : > { %v903_v41 = vpop.permute.xlu1 %902 }
  0xd0   : > { %v899_v60 = vpop.permute.xlu0 %898 }
  0xd3   : > { %v895_v42 = vpop.permute.xlu1 %894 }
  0xd4   : > { %v891_v15 = vpop.permute.xlu0 %890 }
  0xd7   : > { %v887_v43 = vpop.permute.xlu1 %886 }
  0xd8   : > { %v883_v18 = vpop.permute.xlu0 %882 }
  0xdb   : > { %v879_v44 = vpop.permute.xlu1 %878 }
  0xdc   : > { %v875_v21 = vpop.permute.xlu0 %874 }
  0xdf   : > { %v871_v47 = vpop.permute.xlu1 %870 }
  0xe0   : > { %v867_v23 = vpop.permute.xlu0 %866 }
  0xe3   : > { %v863_v53 = vpop.permute.xlu1 %862 }
  0xe5   : > { %v843_v25 = vpop.permute.xlu0 %842 }
  0xe8   : > { %v838_v30 = vpop.permute.xlu1 %837 }
  0xe9   : > { %v828_v26 = vpop.permute.xlu0 %827 }
  0xec   : > { %v833_v32 = vpop.permute.xlu1 %832 }
  0xed   : > { %v823_v27 = vpop.permute.xlu0 %822 }
  0xf1   : > { %v818_v28 = vpop.permute.xlu0 %817 }
  0xf5   : > { %v813_v29 = vpop.permute.xlu0 %812 }
  0xf9   : > { %v808_v31 = vpop.permute.xlu0 %807 }
  0xfd   : > { %v803_v33 = vpop.permute.xlu0 %802 }
 0x101   : > { %v798_v36 = vpop.permute.xlu0 %797 }
 0x105   : > { %v793_v38 = vpop.permute.xlu0 %792 }
 0x110   : > { %v1927_v46 = vpop.f32.mrf.mxu0 }
 0x111   : > { %v926_v24 = vmul.f32 %v1927_v46, %v867_v23 }
 0x112   : > { %v1929_v48 = vpop.f32.mrf.mxu0 }
 0x113   : > { %v925_v57 = vmul.f32 %v863_v53, %v1929_v48 }
 0x114   : > { %v1931_v50 = vpop.f32.mrf.mxu0 }
 0x115   : > { %v928_v22 = vmul.f32 %v1931_v50, %v875_v21 }
 0x116   : > { %v1933_v51 = vpop.f32.mrf.mxu0 }
 0x117   : > { %v927_v52 = vmul.f32 %v871_v47, %v1933_v51 }
 0x118   : > { %v1936_v54 = vpop.f32.mrf.mxu0 }
 0x119   : > { %961 = vrot.lane.b32.xlu0 %v927_v52, %s1698_s10  ;;  %v930_v19 = vmul.f32 %v1936_v54, %v883_v18 }
 0x11a   : > { %v1939_v56 = vpop.f32.mrf.mxu0 }
 0x11b   : > { %v929_v20 = vmul.f32 %v879_v44, %v1939_v56 }
 0x11c   : > { %v1942_v58 = vpop.f32.mrf.mxu0 }
 0x11d   : > { %957 = vrot.lane.b32.xlu0 %v925_v57, %s1698_s10  ;;  %v932_v16 = vmul.f32 %v1942_v58, %v891_v15 }
 0x11e   : > { %v1945_v59 = vpop.f32.mrf.mxu0 }
 0x11f   : > { %v931_v17 = vmul.f32 %v887_v43, %v1945_v59 }
 0x120   : > { %v1947_v61 = vpop.f32.mrf.mxu0 }
 0x121   : > { %v934_v62 = vmul.f32 %v1947_v61, %v899_v60 }
 0x122   : > { %v1950_v63 = vpop.f32.mrf.mxu0 }
 0x123   : > { %975 = vrot.lane.b32.xlu1 %v934_v62, %s1698_s10  ;;  %v933_v14 = vmul.f32 %v895_v42, %v1950_v63 }
 0x124   : > { %v1953_v1 = vpop.f32.mrf.mxu0 }
 0x125   : > { %v936_v2 = vmul.f32 %v1953_v1, %v907_v55  ;;  %v856_v62 = vmul.f32 %v1953_v1, %v823_v27  ;;  %v853_v1 = vmul.f32 %v808_v31, %v1950_v63  ;;  %v850_v63 = vmul.f32 %v1936_v54, %v793_v38 }
 0x126   : > { %v1956_v3 = vpop.f32.mrf.mxu0 }
 0x127   : > { %979 = vrot.lane.b32.xlu1 %v936_v2, %s1698_s10  ;;  %v935_v4 = vmul.f32 %v903_v41, %v1956_v3  ;;  %v788_v41 = vpop.permute.xlu0 %787 }
 0x128   : > { %v1469_v5 = vpop.f32.mrf.mxu0 }
 0x129   : > { %v938_v7 = vmul.f32 %v1469_v5, %v915_v39  ;;  %v858_v52 = vmul.f32 %v1469_v5, %v833_v32  ;;  %v854_v5 = vmul.f32 %v1947_v61, %v813_v29  ;;  %v851_v61 = vmul.f32 %v798_v36, %v1945_v59 }
 0x12a   : > { %v730_v8 = vpop.f32.mrf.mxu0 }
 0x12b   : > { %977 = vrot.lane.b32.xlu1 %v935_v4, %s1698_s10  ;;  %v937_v9 = vmul.f32 %v911_v40, %v730_v8  ;;  %v783_v47 = vpop.permute.xlu0 %782  ;;  %v857_v55 = vmul.f32 %v828_v26, %v730_v8 }
 0x12c   : > { %v1472_v10 = vpop.f32.mrf.mxu0  ;;  %v848_v54 = vmul.f32 %v1931_v50, %v783_v47  ;;  %v1363_v50 = vld [vmem:[%s467_s25] ss:$0 sm:$0xff] }
 0x12d   : > { %v940_v11 = vmul.f32 %v1472_v10, %v923_v45  ;;  %v860_v42 = vmul.f32 %v1472_v10, %v843_v25 }
 0x12e   : > { %v740_v12 = vpop.f32.mrf.mxu0 }
 0x12f   : > { %983 = vrot.lane.b32.xlu1 %v938_v7, %s1698_s10  ;;  %v939_v13 = vmul.f32 %v919_v49, %v740_v12  ;;  %v859_v45 = vmul.f32 %v838_v30, %v740_v12  ;;  %v778_v4 = vpop.permute.xlu0 %777  ;;  %v855_v7 = vmul.f32 %v818_v28, %v1956_v3  ;;  %v852_v3 = vmul.f32 %v1942_v58, %v803_v33 }
 0x130   : > { %v849_v58 = vmul.f32 %v788_v41, %v1939_v56  ;;  %v1024_v56 = vstv %s1362_s17  ;;  %v847_v25 = vmul.f32 %v778_v4, %v1933_v51  ;;  %v1701_v33 = vmov 1.0  }
 0x133   : > { %981 = vrot.lane.b32.xlu1 %v937_v9, %s1698_s10  ;;  %v773_v12 = vpop.permute.xlu0 %772 }
 0x134   : > { %v846_v27 = vmul.f32 %v1927_v46, %v773_v12 }
 0x137   : > { %987 = vrot.lane.b32.xlu1 %v940_v11, %s1698_s10  ;;  %v768_v18 = vpop.permute.xlu0 %767 }
 0x138   : > { %v845_v32 = vmul.f32 %v768_v18, %v1929_v48 }
 0x13b   : > { %985 = vrot.lane.b32.xlu1 %v939_v13, %s1698_s10 }
 0x13f   : > { %973 = vrot.lane.b32.xlu1 %v933_v14, %s1698_s10 }
 0x143   : > { %971 = vrot.lane.b32.xlu1 %v932_v16, %s1698_s10 }
 0x147   : > { %969 = vrot.lane.b32.xlu1 %v931_v17, %s1698_s10 }
 0x14b   : > { %967 = vrot.lane.b32.xlu1 %v930_v19, %s1698_s10 }
 0x14f   : > { %965 = vrot.lane.b32.xlu1 %v929_v20, %s1698_s10  ;;  %v1021_v20 = vlaneseq }
 0x151   : > { %v1022_v23 = vshrl.u32 %v1021_v20, 7 }
 0x153   : > { %963 = vrot.lane.b32.xlu1 %v928_v22, %s1698_s10  ;;  %v1025_v29 = vadd.s32 %v1024_v56, %v1022_v23 }
 0x155   : > { %vm1031_vm2 = vcmp.eq.s32.totalorder %v1025_v29, %v1363_v50 }
 0x157   : > { %959 = vrot.lane.b32.xlu1 %v926_v24, %s1698_s10 }
 0x18b   : > { %v962_v22 = vpop.permute.xlu0 %961 }
 0x18c   : > { %v1007_v28 = vadd.f32 %v962_v22, %v847_v25 }
 0x18f   : > { %v958_v30 = vpop.permute.xlu0 %957 }
 0x190   : > { %v1005_v46 = vadd.f32 %v958_v30, %v845_v32 }
 0x195   : > { %v976_v34 = vpop.permute.xlu1 %975 }
 0x196   : > { %v1014_v11 = vadd.f32 %v976_v34, %v854_v5  ;;  %v1034_v34 = vld [vmem:[%s1822_s15] sm:$0xff] }
 0x199   : > { %v980_v35 = vpop.permute.xlu1 %979 }
 0x19a   : > { %v1016_v9 = vadd.f32 %v980_v35, %v856_v62 }
 0x19d   : > { %v978_v37 = vpop.permute.xlu1 %977 }
 0x19e   : > { %v1015_v8 = vadd.f32 %v978_v37, %v855_v7 }
 0x1a1   : > { %v984_v39 = vpop.permute.xlu1 %983 }
 0x1a2   : > { %v1018_v57 = vadd.f32 %v984_v39, %v858_v52 }
 0x1a5   : > { %v982_v40 = vpop.permute.xlu1 %981 }
 0x1a6   : > { %v1017_v2 = vadd.f32 %v982_v40, %v857_v55 }
 0x1a9   : > { %v988_v43 = vpop.permute.xlu1 %987 }
 0x1aa   : > { %v1020_v44 = vadd.f32 %v988_v43, %v860_v42 }
 0x1ac   : > { %1474 = vmatpush3.msra.mxu1 %v1020_v44 }
 0x1ad   : > { %v986_v49 = vpop.permute.xlu1 %985  ;;  %1475 = vmatprep.subr.mxu1 %v1699_v6 }
 0x1ae   : > { %v1019_v53 = vadd.f32 %v986_v49, %v859_v45 }
 0x1b0   : > { %1476 = vmatpush3.msra.mxu1 %v1019_v53 }
 0x1b1   : > { %v974_v60 = vpop.permute.xlu1 %973  ;;  %1477 = vmatprep.subr.mxu1 %v1699_v6 }
 0x1b2   : > { %1478 = vmatpush3.msra.mxu1 %v1018_v57  ;;  %v1013_v14 = vadd.f32 %v974_v60, %v853_v1 }
 0x1b3   : > { %1479 = vmatprep.subr.mxu1 %v1699_v6 }
 0x1b4   : > { %1480 = vmatpush3.msra.mxu1 %v1017_v2 }
 0x1b5   : > { %v972_v10 = vpop.permute.xlu1 %971  ;;  %1481 = vmatprep.subr.mxu1 %v1699_v6 }
 0x1b6   : > { %1482 = vmatpush3.msra.mxu1 %v1016_v9  ;;  %v1012_v15 = vadd.f32 %v972_v10, %v852_v3 }
 0x1b7   : > { %1483 = vmatprep.subr.mxu1 %v1699_v6 }
 0x1b8   : > { %1484 = vmatpush3.msra.mxu1 %v1015_v8 }
 0x1b9   : > { %v970_v13 = vpop.permute.xlu1 %969  ;;  %1485 = vmatprep.subr.mxu1 %v1699_v6 }
 0x1ba   : > { %1486 = vmatpush3.msra.mxu1 %v1014_v11  ;;  %v1011_v17 = vadd.f32 %v970_v13, %v851_v61 }
 0x1bb   : > { %1487 = vmatprep.subr.mxu1 %v1699_v6 }
 0x1bc   : > { %1488 = vmatpush3.msra.mxu1 %v1013_v14 }
 0x1bd   : > { %v968_v16 = vpop.permute.xlu1 %967  ;;  %1489 = vmatprep.subr.mxu1 %v1699_v6 }
 0x1be   : > { %1490 = vmatpush3.msra.mxu1 %v1012_v15  ;;  %v1010_v19 = vadd.f32 %v968_v16, %v850_v63 }
 0x1bf   : > { %1491 = vmatprep.subr.mxu1 %v1699_v6 }
 0x1c0   : > { %1492 = vmatpush3.msra.mxu1 %v1011_v17 }
 0x1c1   : > { %v966_v21 = vpop.permute.xlu1 %965  ;;  %1493 = vmatprep.subr.mxu1 %v1699_v6 }
 0x1c2   : > { %v1009_v59 = vadd.f32 %v966_v21, %v849_v58  ;;  %1494 = vmatpush3.msra.mxu1 %v1010_v19 }
 0x1c3   : > { %1495 = vmatprep.subr.mxu1 %v1699_v6 }
 0x1c4   : > { %1496 = vmatpush3.msra.mxu1 %v1009_v59 }
 0x1c5   : > { %v964_v24 = vpop.permute.xlu1 %963  ;;  %1497 = vmatprep.subr.mxu1 %v1699_v6 }
 0x1c6   : > { %v1008_v26 = vadd.f32 %v964_v24, %v848_v54 }
 0x1c8   : > { %1498 = vmatpush3.msra.mxu1 %v1008_v26 }
 0x1c9   : > { %v960_v31 = vpop.permute.xlu1 %959  ;;  %1499 = vmatprep.subr.mxu1 %v1699_v6 }
 0x1ca   : > { %v1006_v51 = vadd.f32 %v960_v31, %v846_v27  ;;  %1500 = vmatpush3.msra.mxu1 %v1007_v28 }
 0x1cb   : > { %1501 = vmatprep.subr.mxu1 %v1699_v6 }
 0x1cc   : > { %1502 = vmatpush3.msra.mxu1 %v1006_v51 }
 0x1cd   : > { %1503 = vmatprep.subr.mxu1 %v1699_v6 }
 0x1ce   : > { %1504 = vmatpush3.msra.mxu1 %v1005_v46 }
 0x1cf   : > { %1506 = vmatmul.mubr.msk.f32.vlgmr.msra.gmra.mxu1 %vm1031_vm2, %v1701_v33 }
 0x28f   : > { %v1101_v35 = vpop.f32.mrf.mxu1 }
 0x290   : > { %v1105_v36 = vadd.f32 %v1101_v35, %v1034_v34 }
 0x291   : > { %v1507_v37 = vpop.f32.mrf.mxu1 }
 0x292   : > { %1106 = vst.msk [vmem:[%s1822_s15] sm:$0xff] %vm528_vm0, %v1105_v36 }
 0x293 PF: > { %1508 = vmatprep.subr.mxu0 %v1695_v0  ;;  %v1115_v48 = vld [vmem:[%s2089_s7 + $0x18] sm:$0xff]  ;;  %v1114_v6 = vld [vmem:[%s2089_s7 + $0x10] sm:$0xff]  ;;  %vm1702_vm3 = vmmov 0   ;;  %v1113_v38 = vld [vmem:[%s2089_s7 + $0x8] sm:$0xff]  ;;  %s1369_s1 = sshll.u32 %s1683_s20, 7  ;;  %s1215_s21 = sshll.u32 %s1822_s15, 4  ;;  %s1216_s21 = int_to_ptr.vmem [resolvable:$true] %s1215_s21 }
 0x294   : > { %1509 = vmatpush3.msra.mxu0 %v1115_v48  ;;  %1516 = vmatprep.mubr.msk.f32.mxu0 %vm1702_vm3, %v1695_v0  ;;  %v1112_v39 = vld [vmem:[%s2089_s7] sm:$0xff]  ;;  %s1213_s24 = scalar_lea.hbm %s2091_s9, %s1369_s1  ;;  %s2109_s10 = sand.u32 1, %s1675_s18  }
 0x295   : > { %1510 = vmatprep.subr.mxu0 %v1695_v0  ;;  %v1111_v40 = vld [vmem:[%s1836_s11] sm:$0xff]  ;;  %s1202_s17 = scalar_lea.sflag [#allocation6], %s2109_s10  ;;  %s1613_s26 = scalar_lea.vmem %s1216_s21, 128 }
 0x296   : > { %1511 = vmatpush3.msra.mxu0 %v1114_v6  ;;  %v1367_v43 = vld [vmem:[%s2090_s8] ss:$0 sm:$0xff]  ;;  %p1614_p2 = scmp.ne.s32.totalorder %s1216_s21, %s1613_s26  ;;  %s1703_s13 = smov [#allocation5]  }
 0x297   : > { %1512 = vmatprep.subr.mxu0 %v1695_v0  ;;  %s1617_s30 = sshll.u32 %s1703_s13, 4  ;;  %s1618_s30 = int_to_ptr.vmem [resolvable:$false] %s1617_s30 }
 0x298   : > { %1513 = vmatpush3.msra.mxu0 %v1113_v38  ;;  %p1615_p3 = pnand %p1614_p2, %p1800_p0  ;;  %s1619_s20 = scalar_lea.vmem %s1618_s30, 256 }
 0x299   : > { %1514 = vmatprep.subr.mxu0 %v1695_v0  ;;  %v1110_v41 = vld [vmem:[%s1822_s15] sm:$0xff]  ;;  %p1620_p6 = scmp.lt.s32.totalorder %s1216_s21, %s1618_s30  ;;  %p1621_p7 = scmp.lt.s32.totalorder %s1619_s20, %s1613_s26 }
 0x29a   : > { %1515 = vmatpush3.msra.mxu0 %v1112_v39  ;;  %p1616_p5 = pneg %p1615_p3 }
 0x29b   : > { %1517 = vmatmul.mubr.msk.f32.vlgmr.msra.gmra.mxu0 %vm528_vm0, %v1111_v40  ;;  %p1622_p8 = por %p1621_p7, %p1620_p6 }
 0x29d   : > { %p1623_p9 = pnand %p1622_p8, %p1616_p5 }
 0x35b   : > { %v1186_v42 = vpop.f32.mrf.mxu0 }
 0x35c   : > { %v1190_v44 = vadd.f32 %v1186_v42, %v1110_v41 }
 0x35d   : > { %v1518_v45 = vpop.f32.mrf.mxu0 }
 0x35e   : > { %v1198_v47 = vadd.f32 %v1367_v43, %v1190_v44 }
 0x360   : > { %v1199_v49 = vmax.f32 %v1198_v47, 0.0 }
 0x362   : > { %1200 = vst.msk [vmem:[%s1822_s15] sm:$0xff] %vm528_vm0, %v1199_v49 }
 0x363   : > { %1626 = shalt.err (!%p1623_p9)
}
 0x364   : > { %s1627_s25 = scalar_lea.hbm %s1213_s24, 128  ;;  %s1631_s16 = scalar_lea.hbm %s2091_s9, 256 }
 0x365   : > { %p1628_p10 = scmp.ne.s32.totalorder %s1213_s24, %s1627_s25  ;;  %p1632_p13 = scmp.lt.s32.totalorder %s1213_s24, %s2091_s9 }
 0x366   : > { %p1633_p1 = scmp.lt.s32.totalorder %s1631_s16, %s1627_s25 }
 0x367   : > { %p1629_p11 = pnand %p1628_p10, %p1800_p0 }
 0x368   : > { %p1634_p2 = por %p1633_p1, %p1632_p13 }
 0x369   : > { %p1630_p12 = pneg %p1629_p11 }
 0x36b   : > { %p1635_p3 = pnand %p1634_p2, %p1630_p12 }
 0x36d   : > { %1638 = shalt.err (!%p1635_p3)
}
 0x36e   : > { %1519 = dma.vmem_to_hbm [thread:$0]  (%p1800_p0), %s1216_s21, 128, %s1213_s24, %s1202_s17  }
 0x36f PF: > { %s2110_s12 = sld [smem:[#allocation9_spill]]  ;;  %p1525_p5 = scmp.ge.s32.totalorder %s1691_s22, 2 }
 0x371   : > { %p1522_p6 = pnand %p1525_p5, %p1807_p4 }
 0x373   : > { %p1523_p7 = pneg %p1522_p6 }
 0x375   : > { %s1227_s6 = sand.u32 1, %s2110_s12  }
 0x376   : > { %s1228_s19 = scalar_lea.sflag [#allocation6], %s1227_s6 }
 0x377   : > { %1666 = dma.done.wait (%p1523_p7), %s1228_s19, 128  }
 0x378   : > { %1668 = vsyncadd (%p1523_p7), %s1228_s19, 4294967168  ;;  %s32_s22 = sadd.s32 1, %s1691_s22   ;;  %s2112_s11 = sld [smem:[#allocation10_spill]] }
 0x379   : > { %p29_p8 = scmp.ge.s32.totalorder %s32_s22, 4   ;;  %s2113_s19 = sld [smem:[#allocation14_spill]] }
 0x37a   : > { %s2114_s20 = sld [smem:[#allocation11_spill]]  ;;  %s2116_s1 = smov %s1675_s18 }
 0x37b   : > { %s2115_s21 = sld [smem:[#allocation12_spill]]  ;;  %31 = sbr.rel (!%p29_p8) target bundleno = 30 (0x1e), region = 104 }
 0x37e   : > { %s2117_s18 = smov %s2112_s11 }
 0x380   :  { %1233 = vsyncpa [#allocation6], 1 }
 0x381   :  { %1235 = vsyncpa [#allocation6 + $0x1], 1 }

</bundles_post_ra>
